<compile_context>
chip_gen: v7x
topology: tpu7x:2x2x1
jax: 0.10.0
libtpu: 0.0.40
codegen_flags: <defaults>
</compile_context>

<pallas_src>
import jax
import jax.numpy as jnp
from jax.experimental import pallas as pl
from jax.experimental.pallas import tpu as pltpu


# Live (double-buffered) tile-byte budget.  Kept well inside v5e's 16 MiB
# default scoped VMEM and v7x's 64 MiB physical VMEM.
_VMEM_TILE_BUDGET_BYTES = 12 * 1024 * 1024
_VMEM_LIMIT_BYTES = 32 * 1024 * 1024


def _assemble_generic_kernel(prefix_ref, ctx_ref, suffix_ref, out_ref):
    # Per grid point (block b, class-tile c):
    #   prefix_ref: (1, C_TILE, 1,     D)
    #   ctx_ref:    (1, n_ctx,         D)   (constant across c -> fetched once per b)
    #   suffix_ref: (1, C_TILE, L_suf, D)
    #   out_ref:    (1, C_TILE, seq,   D)
    n_ctx = ctx_ref.shape[1]
    c_tile = out_ref.shape[1]
    d = out_ref.shape[3]

    # Direct slice stores (static offsets/sizes) -- no in-VMEM concatenate.
    out_ref[0, :, 0:1, :] = prefix_ref[0].astype(out_ref.dtype)

    # Cast ctx in-kernel and broadcast it over the class tile once (register-
    # level replication; the stores themselves are unavoidable output traffic).
    ctx = ctx_ref[0].astype(out_ref.dtype)                      # (n_ctx, D)
    out_ref[0, :, 1:1 + n_ctx, :] = jnp.broadcast_to(
        ctx[None, :, :], (c_tile, n_ctx, d))

    out_ref[0, :, 1 + n_ctx:, :] = suffix_ref[0].astype(out_ref.dtype)


def _assemble_csc_kernel(prefix_ref, ctx_ref, suffix_ref, out_ref):
    # Class-specific contexts: ctx_ref is (1, C_TILE, n_ctx, D); no broadcast.
    n_ctx = ctx_ref.shape[2]
    out_ref[0, :, 0:1, :] = prefix_ref[0].astype(out_ref.dtype)
    out_ref[0, :, 1:1 + n_ctx, :] = ctx_ref[0].astype(out_ref.dtype)
    out_ref[0, :, 1 + n_ctx:, :] = suffix_ref[0].astype(out_ref.dtype)


def _pick_c_tile(n_cls, n_ctx, l_suf, seq_len, ctx_dim, itemsize, ctx_per_class):
    """Largest class-tile whose double-buffered tiles fit the VMEM budget."""
    # Per-class bytes resident in VMEM each step: prefix+suffix in, full row out,
    # plus the ctx slab if it is class-specific.
    per_class = (1 + l_suf + seq_len) * ctx_dim * itemsize
    if ctx_per_class:
        per_class += n_ctx * ctx_dim * itemsize
    per_class *= 2  # double buffering (inputs + output pipelined)
    fixed = 0 if ctx_per_class else 2 * n_ctx * ctx_dim * itemsize
    budget = max(_VMEM_TILE_BUDGET_BYTES - fixed, per_class)
    c_tile = budget // per_class
    return int(max(1, min(c_tile, n_cls)))


def prompt_matrix_forward(ctx, token_prefix, token_suffix):
    """Pallas implementation of PromptMatrixLearner.forward (position='end').

    Args:
      ctx:          (n_block, n_ctx, ctx_dim)               generic context, or
                    (n_block, n_cls, n_ctx, ctx_dim)         class-specific (CSC)
      token_prefix: (n_block, n_cls, 1, ctx_dim)
      token_suffix: (n_block, n_cls, L_suf, ctx_dim)
    Returns:
      prompts_matrix: (n_block, n_cls, 1 + n_ctx + L_suf, ctx_dim)
    """
    n_block, n_cls, one, ctx_dim = token_prefix.shape
    assert one == 1
    l_suf = token_suffix.shape[2]
    csc = ctx.ndim == 4
    n_ctx = ctx.shape[2] if csc else ctx.shape[1]
    assert n_ctx > 0 and l_suf > 0, "empty ctx / suffix not supported"
    seq_len = 1 + n_ctx + l_suf
    dtype = token_prefix.dtype

    c_tile = _pick_c_tile(n_cls, n_ctx, l_suf, seq_len, ctx_dim,
                          jnp.dtype(dtype).itemsize, ctx_per_class=csc)
    # Class-tile axis innermost so (in the generic path) the ctx block index is
    # constant across consecutive steps (ctx fetched once per block).
    grid = (n_block, pl.cdiv(n_cls, c_tile))

    if csc:
        kernel = _assemble_csc_kernel
        ctx_spec = pl.BlockSpec((1, c_tile, n_ctx, ctx_dim),
                                lambda b, c: (b, c, 0, 0))
    else:
        kernel = _assemble_generic_kernel
        ctx_spec = pl.BlockSpec((1, n_ctx, ctx_dim), lambda b, c: (b, 0, 0))

    return pl.pallas_call(
        kernel,
        out_shape=jax.ShapeDtypeStruct((n_block, n_cls, seq_len, ctx_dim), dtype),
        grid_spec=pltpu.PrefetchScalarGridSpec(
            num_scalar_prefetch=0,
            grid=grid,
            in_specs=[
                pl.BlockSpec((1, c_tile, 1, ctx_dim), lambda b, c: (b, c, 0, 0)),
                ctx_spec,
                pl.BlockSpec((1, c_tile, l_suf, ctx_dim), lambda b, c: (b, c, 0, 0)),
            ],
            out_specs=pl.BlockSpec((1, c_tile, seq_len, ctx_dim),
                                   lambda b, c: (b, c, 0, 0)),
        ),
        compiler_params=pltpu.CompilerParams(
            dimension_semantics=("parallel", "parallel"),
            vmem_limit_bytes=_VMEM_LIMIT_BYTES),
    )(token_prefix, ctx, token_suffix)


def prompt_matrix_reference(ctx, token_prefix, token_suffix):
    """Pure-JAX reference mirroring the PyTorch forward ('end' position)."""
    n_cls = token_prefix.shape[1]
    if ctx.ndim == 3:
        n_block, n_ctx, ctx_dim = ctx.shape
        # ctx.unsqueeze(0).expand(n_cls,...).permute(1,0,2,3)
        ctx = jnp.broadcast_to(ctx[None], (n_cls, n_block, n_ctx, ctx_dim))
        ctx = jnp.transpose(ctx, (1, 0, 2, 3))
    ctx = ctx.astype(token_prefix.dtype)
    return jnp.concatenate([token_prefix, ctx, token_suffix], axis=2)


if __name__ == "__main__":
    # Small, deterministic synthetic shapes consistent with the module:
    n_block = 4     # cfg.TRAINER.DPL.N_BLOCK
    n_cls = 3       # number of classnames
    n_ctx = 4       # cfg.TRAINER.DPL.N_CTX
    ctx_dim = 128   # clip_model.ln_final.weight.shape[0]
    seq_len = 16    # tokenized prompt length (CLIP uses 77; kept small here)
    l_suf = seq_len - 1 - n_ctx

    key = jax.random.PRNGKey(0)
    k_ctx, k_ctx_csc, k_emb = jax.random.split(key, 3)

    # nn.init.normal_(ctx_vectors, std=0.02)
    ctx = (0.02 * jax.random.normal(
        k_ctx, (n_block, n_ctx, ctx_dim))).astype(jnp.float32)
    ctx_csc = (0.02 * jax.random.normal(
        k_ctx_csc, (n_block, n_cls, n_ctx, ctx_dim))).astype(jnp.float32)

    # Synthetic token embedding (stands in for clip_model.token_embedding output),
    # split into prefix (SOS) and suffix (class tokens + EOS), broadcast over blocks.
    embedding = jax.random.normal(k_emb, (n_cls, seq_len, ctx_dim), dtype=jnp.float32)
    token_prefix = jnp.broadcast_to(embedding[None, :, :1, :],
                                    (n_block, n_cls, 1, ctx_dim))
    token_suffix = jnp.broadcast_to(embedding[None, :, 1 + n_ctx:, :],
                                    (n_block, n_cls, l_suf, ctx_dim))

    # Generic-context path (cfg.TRAINER.DPL.CSC = False, the default).
    out = jax.block_until_ready(
        prompt_matrix_forward(ctx, token_prefix, token_suffix))
    ref = prompt_matrix_reference(ctx, token_prefix, token_suffix)
    assert out.shape == (n_block, n_cls, seq_len, ctx_dim), out.shape
    assert jnp.allclose(out, ref, atol=0.0, rtol=0.0), "generic-ctx mismatch"

    # Class-specific-context path (cfg.TRAINER.DPL.CSC = True).
    out_csc = jax.block_until_ready(
        prompt_matrix_forward(ctx_csc, token_prefix, token_suffix))
    ref_csc = prompt_matrix_reference(ctx_csc, token_prefix, token_suffix)
    assert out_csc.shape == (n_block, n_cls, seq_len, ctx_dim), out_csc.shape
    assert jnp.allclose(out_csc, ref_csc, atol=0.0, rtol=0.0), "CSC-ctx mismatch"

    print("KERNEL_OK")
</pallas_src>

<mosaic_0001>
module attributes {stable_mosaic.version = 11 : i64} {
  func.func @_assemble_generic_kernel(%arg0: i32, %arg1: i32, %arg2: memref<1x3x1x128xf32, #tpu.memory_space<vmem>>, %arg3: memref<1x4x128xf32, #tpu.memory_space<vmem>>, %arg4: memref<1x3x11x128xf32, #tpu.memory_space<vmem>>, %arg5: memref<1x3x16x128xf32, #tpu.memory_space<vmem>>) attributes {dimension_semantics = [#tpu.dimension_semantics<parallel>, #tpu.dimension_semantics<parallel>], iteration_bounds = array<i64: 4, 1>, scalar_prefetch = 0 : i64, scratch_operands = 0 : i64, tpu.core_type = #tpu.core_type<tc>, window_params = [{transform_indices = @transform_0, window_bounds = array<i64: 1, 3, 1, 128>}, {transform_indices = @transform_1, window_bounds = array<i64: 1, 4, 128>}, {transform_indices = @transform_2, window_bounds = array<i64: 1, 3, 11, 128>}, {transform_indices = @transform_3, window_bounds = array<i64: 1, 3, 16, 128>}]} {
    %c0 = arith.constant 0 : index
    %c0_0 = arith.constant 0 : index
    %c0_1 = arith.constant 0 : index
    %c0_2 = arith.constant 0 : index
    %0 = vector.load %arg2[%c0, %c0_0, %c0_1, %c0_2] : memref<1x3x1x128xf32, #tpu.memory_space<vmem>>, vector<1x3x1x128xf32>
    %1 = vector.shape_cast %0 : vector<1x3x1x128xf32> to vector<3x1x128xf32>
    %c0_3 = arith.constant 0 : index
    %c0_4 = arith.constant 0 : index
    %c0_5 = arith.constant 0 : index
    %c0_6 = arith.constant 0 : index
    %2 = vector.load %arg5[%c0_3, %c0_4, %c0_5, %c0_6] : memref<1x3x16x128xf32, #tpu.memory_space<vmem>>, vector<1x3x1x128xf32>
    %3 = vector.shape_cast %2 : vector<1x3x1x128xf32> to vector<3x1x128xf32>
    %4 = vector.shape_cast %1 : vector<3x1x128xf32> to vector<1x3x1x128xf32>
    tpu.vector_store %arg5[%c0_3, %c0_4, %c0_5, %c0_6], %4 {strides = array<i32>} : memref<1x3x16x128xf32, #tpu.memory_space<vmem>>, vector<1x3x1x128xf32>,
    %c0_7 = arith.constant 0 : index
    %c0_8 = arith.constant 0 : index
    %c0_9 = arith.constant 0 : index
    %5 = vector.load %arg3[%c0_7, %c0_8, %c0_9] : memref<1x4x128xf32, #tpu.memory_space<vmem>>, vector<1x4x128xf32>
    %6 = vector.shape_cast %5 : vector<1x4x128xf32> to vector<4x128xf32>
    %7 = vector.shape_cast %6 : vector<4x128xf32> to vector<1x4x128xf32>
    %8 = vector.shape_cast %7 : vector<1x4x128xf32> to vector<1x4x128xf32>
    %9 = vector.broadcast %8 : vector<1x4x128xf32> to vector<3x4x128xf32>
    %c0_10 = arith.constant 0 : index
    %c0_11 = arith.constant 0 : index
    %c1 = arith.constant 1 : index
    %c0_12 = arith.constant 0 : index
    %10 = vector.load %arg5[%c0_10, %c0_11, %c1, %c0_12] : memref<1x3x16x128xf32, #tpu.memory_space<vmem>>, vector<1x3x4x128xf32>
    %11 = vector.shape_cast %10 : vector<1x3x4x128xf32> to vector<3x4x128xf32>
    %12 = vector.shape_cast %9 : vector<3x4x128xf32> to vector<1x3x4x128xf32>
    tpu.vector_store %arg5[%c0_10, %c0_11, %c1, %c0_12], %12 {strides = array<i32>} : memref<1x3x16x128xf32, #tpu.memory_space<vmem>>, vector<1x3x4x128xf32>,
    %c0_13 = arith.constant 0 : index
    %c0_14 = arith.constant 0 : index
    %c0_15 = arith.constant 0 : index
    %c0_16 = arith.constant 0 : index
    %13 = vector.load %arg4[%c0_13, %c0_14, %c0_15, %c0_16] : memref<1x3x11x128xf32, #tpu.memory_space<vmem>>, vector<1x3x11x128xf32>
    %14 = vector.shape_cast %13 : vector<1x3x11x128xf32> to vector<3x11x128xf32>
    %c0_17 = arith.constant 0 : index
    %c0_18 = arith.constant 0 : index
    %c5 = arith.constant 5 : index
    %c0_19 = arith.constant 0 : index
    %15 = vector.load %arg5[%c0_17, %c0_18, %c5, %c0_19] : memref<1x3x16x128xf32, #tpu.memory_space<vmem>>, vector<1x3x11x128xf32>
    %16 = vector.shape_cast %15 : vector<1x3x11x128xf32> to vector<3x11x128xf32>
    %17 = vector.shape_cast %14 : vector<3x11x128xf32> to vector<1x3x11x128xf32>
    tpu.vector_store %arg5[%c0_17, %c0_18, %c5, %c0_19], %17 {strides = array<i32>} : memref<1x3x16x128xf32, #tpu.memory_space<vmem>>, vector<1x3x11x128xf32>,
    return
  }
  func.func @transform_0(%arg0: i32, %arg1: i32) -> (i32, i32, i32, i32) {
    %c0_i32 = arith.constant 0 : i32
    %c0_i32_0 = arith.constant 0 : i32
    %c0_i32_1 = arith.constant 0 : i32
    return %arg0, %arg1, %c0_i32, %c0_i32_0 : i32, i32, i32, i32
  }
  func.func @transform_1(%arg0: i32, %arg1: i32) -> (i32, i32, i32) {
    %c0_i32 = arith.constant 0 : i32
    %c0_i32_0 = arith.constant 0 : i32
    %c0_i32_1 = arith.constant 0 : i32
    return %arg0, %c0_i32, %c0_i32_0 : i32, i32, i32
  }
  func.func @transform_2(%arg0: i32, %arg1: i32) -> (i32, i32, i32, i32) {
    %c0_i32 = arith.constant 0 : i32
    %c0_i32_0 = arith.constant 0 : i32
    %c0_i32_1 = arith.constant 0 : i32
    return %arg0, %arg1, %c0_i32, %c0_i32_0 : i32, i32, i32, i32
  }
  func.func @transform_3(%arg0: i32, %arg1: i32) -> (i32, i32, i32, i32) {
    %c0_i32 = arith.constant 0 : i32
    %c0_i32_0 = arith.constant 0 : i32
    %c0_i32_1 = arith.constant 0 : i32
    return %arg0, %arg1, %c0_i32, %c0_i32_0 : i32, i32, i32, i32
  }
}

</mosaic_0001>

<bundles_post_ra>
// kernel: tpu_custom_call.1
= control target key start
LH: loop header
LB: loop body
LE: loop exit
PB: predicated region body
PF: predicated region fallthrough
CT: control target
= control target key end

     0   :  { %8 = vsyncpa [#allocation3], 0  ;;  %s700_s0 = inlined_call_operand.vmem [shape: f32[4,3,1,128], index: 0, kind: input, shape index: {}]   ;;  %s701_s1 = inlined_call_operand.vmem [shape: f32[4,4,128], index: 1, kind: input, shape index: {}]   ;;  %s702_s2 = inlined_call_operand.vmem [shape: f32[4,3,11,128], index: 2, kind: input, shape index: {}]   ;;  %s703_s3 = inlined_call_operand.hbm [shape: f32[4,3,16,128], index: 3, kind: output, shape index: {}]  }
   0x1   :  { %10 = vsyncpa [#allocation3 + $0x1], 0  ;;  %s575_s12 = smov 0   ;;  %s577_s13 = smov 0  }
   0x2   :  { %s579_s14 = smov 0   ;;  %s581_s15 = smov 0  }
   0x3   :  { %s583_s16 = smov 0   ;;  %s585_s17 = smov 0  }
   0x4 LB: > { %s401_s18 = sadd.s32 4294967295, %s550_s17   ;;  %s402_s19 = sadd.s32 4294967294, %s550_s17   ;;  %s550_s17 = sphi %s585_s17, %s16_s17   ;;  %s546_s16 = sphi %s583_s16, %s710_s16   ;;  %s542_s15 = sphi %s581_s15, %s709_s15   ;;  %s538_s14 = sphi %s579_s14, %s708_s14   ;;  %s534_s13 = sphi %s577_s13, %s707_s13   ;;  %s530_s12 = sphi %s575_s12, %s706_s12  }
   0x5   : > { %s28_s20 = sadd.s32 1, %s546_s16  ;;  %s119_s21 = sadd.s32 1, %s538_s14 }
   0x6   : > { %p30_p0 = scmp.ge.s32.totalorder %s28_s20, 4  ;;  %p129_p1 = scmp.ne.s32.totalorder %s538_s14, %s534_s13 }
   0x7   : > { %p130_p2 = scmp.eq.s32.totalorder %s401_s18, 3  ;;  %p135_p3 = scmp.ne.s32.totalorder %s534_s13, %s530_s12 }
   0x8   : > { %s712_s20 = smov (%p30_p0, %s28_s20), 0  ;;  %p136_p5 = scmp.eq.s32.totalorder %s402_s19, 3 }
   0x9   : > { %p615_p4 = por %p130_p2, %p129_p1  ;;  %s114_s23 = ssub.s32 %s546_s16, %s712_s20 }
   0xa   : > { %p405_p6 = scmp.ge.s32.totalorder %s550_s17, 1  ;;  %p117_p7 = scmp.eq.s32.totalorder %s114_s23, 0 }
   0xb   : > { %p622_p8 = por %p136_p5, %p135_p3  ;;  %p187_p9 = scmp.lt.s32.totalorder %s550_s17, 5 }
   0xc   : > { %s628_s25 = scalar_select %p117_p7, %s538_s14, %s119_s21  }
   0xd   : > { %p188_p10 = pnand %p405_p6, %p187_p9 }
   0xe   : > { %s225_s26 = sand.u32 (!%p188_p10), 1, %s534_s13   ;;  %p229_p11 = scmp.lt.s32.totalorder (!%p188_p10), %s542_s15, 3 }
   0xf   : > { %191 = sbr.rel (%p188_p10) target bundleno = 55 (0x37), region = 32 }
  0x10   : > { %s411_s27 = smul.u32 (!%p188_p10), 48, %s225_s26 }
  0x11   : > { %s414_s29 = smul.u32 (!%p188_p10), 768, %s542_s15 }
  0x12   : > { %s227_s18 = scalar_lea.vmem (!%p188_p10), [#allocation2], %s411_s27 }
  0x13   : > { %s292_s27 = sshll.u32 (!%p188_p10), %s227_s18, 4  ;;  %s650_s27 = int_to_ptr.vmem [resolvable:$true] %s292_s27 }
  0x16   : > { %s230_s28 = scalar_select %p229_p11, %s542_s15, 3 }
  0x18   : > { %s412_s30 = smul.u32 3, %s230_s28  ;;  %s406_s4 = sshll.u32 %s230_s28, 2 }
  0x19   : > { %s240_s7 = scalar_lea.vmem %s701_s1, %s406_s4  ;;  %s413_s8 = smul.u32 48, %s230_s28 }
  0x1a   : > { %s235_s11 = scalar_lea.vmem %s700_s0, %s412_s30  ;;  %v259_v0 = vld [vmem:[%s240_s7] sm:$0xf]  ;;  %s648_s28 = scalar_lea.hbm %s703_s3, %s414_s29 }
  0x1b   : > { %v253_v1 = vld [vmem:[%s235_s11] sm:$0x1]  ;;  %v254_v2 = vld [vmem:[%s235_s11 + $0x1] sm:$0x1]  ;;  %v255_v3 = vld [vmem:[%s235_s11 + $0x2] sm:$0x1]  ;;  %s250_s21 = scalar_lea.vmem %s702_s2, %s413_s8 }
  0x1c   : > { %260 = vst [vmem:[%s227_s18 + $0x1] sm:$0xf] %v259_v0  ;;  %261 = vst [vmem:[%s227_s18 + $0x11] sm:$0xf] %v259_v0  ;;  %v263_v4 = vld [vmem:[%s250_s21] sm:$0xff]  ;;  %v265_v6 = vld [vmem:[%s250_s21 + $0x10] sm:$0xff] }
  0x1d   : > { %262 = vst [vmem:[%s227_s18 + $0x21] sm:$0xf] %v259_v0  ;;  %256 = vst [vmem:[%s227_s18] sm:$0x1] %v253_v1  ;;  %v264_v5 = vld [vmem:[%s250_s21 + $0x8] sm:$0x7]  ;;  %v267_v8 = vld [vmem:[%s250_s21 + $0x20] sm:$0xff] }
  0x1e   : > { %257 = vst [vmem:[%s227_s18 + $0x10] sm:$0x1] %v254_v2  ;;  %258 = vst [vmem:[%s227_s18 + $0x20] sm:$0x1] %v255_v3  ;;  %v266_v7 = vld [vmem:[%s250_s21 + $0x18] sm:$0x7] }
  0x1f   : > { %269 = vst [vmem:[%s227_s18 + $0x5] sm:$0xff] %v263_v4  ;;  %270 = vst [vmem:[%s227_s18 + $0xd] sm:$0x7] %v264_v5  ;;  %v268_v9 = vld [vmem:[%s250_s21 + $0x28] sm:$0x7]  ;;  %s654_s29 = scalar_lea.sflag [#allocation3], %s225_s26 }
  0x20   : > { %271 = vst [vmem:[%s227_s18 + $0x15] sm:$0xff] %v265_v6  ;;  %272 = vst [vmem:[%s227_s18 + $0x1d] sm:$0x7] %v266_v7  ;;  %s472_s30 = scalar_lea.vmem %s650_s27, 768  ;;  %s552_s4 = smov [#allocation2]  }
  0x21   : > { %273 = vst [vmem:[%s227_s18 + $0x25] sm:$0xff] %v267_v8  ;;  %274 = vst [vmem:[%s227_s18 + $0x2d] sm:$0x7] %v268_v9  ;;  %p473_p12 = scmp.ne.s32.totalorder %s650_s27, %s472_s30  ;;  %s476_s6 = sshll.u32 %s552_s4, 4  ;;  %s477_s6 = int_to_ptr.vmem [resolvable:$false] %s476_s6 }
  0x22   : > { %s478_s7 = scalar_lea.vmem %s477_s6, 1536  ;;  %p479_p1 = scmp.lt.s32.totalorder %s650_s27, %s477_s6 }
  0x23   : > { %p474_p13 = pnand %p473_p12, %p615_p4  ;;  %p480_p2 = scmp.lt.s32.totalorder %s478_s7, %s472_s30 }
  0x25   : > { %p475_p0 = pneg %p474_p13  ;;  %p481_p3 = por %p480_p2, %p479_p1 }
  0x27   : > { %p482_p5 = pnand %p481_p3, %p475_p0 }
  0x29   : > { %485 = shalt.err (!%p482_p5)
}
  0x2a   : > { %s486_s26 = scalar_lea.hbm %s648_s28, 768  ;;  %s490_s10 = scalar_lea.hbm %s703_s3, 3072 }
  0x2b   : > { %p487_p6 = scmp.ne.s32.totalorder %s648_s28, %s486_s26  ;;  %p491_p10 = scmp.lt.u32.totalorder %s648_s28, %s703_s3 }
  0x2c   : > { %p492_p11 = scmp.lt.u32.totalorder %s490_s10, %s486_s26  ;;  %p494_p13 = scmp.lt.u32.totalorder %s486_s26, %s648_s28 }
  0x2d   : > { %p488_p7 = pnand %p487_p6, %p615_p4 }
  0x2e   : > { %p493_p12 = por %p492_p11, %p491_p10 }
  0x2f   : > { %p489_p9 = pneg %p488_p7 }
  0x30   : > { %p495_p0 = por %p494_p13, %p493_p12 }
  0x32   : > { %p496_p1 = pnand %p495_p0, %p489_p9 }
  0x34   : > { %499 = shalt.err (!%p496_p1)
}
  0x35   : > { %s553_s15 = smov 128   ;;  %s554_s19 = smov 8  }
  0x36   : > { %415 = dma.vmem_to_hbm [thread:$0]  (%p615_p4), %s650_s27, 768, %s648_s28, %s654_s29, %s553_s15, %s553_s15, %s554_s19  }
  0x37 PF: > { %p421_p2 = scmp.ge.s32.totalorder %s550_s17, 2  ;;  %s307_s21 = sand.u32 1, %s530_s12  }
  0x38   : > { %s308_s23 = scalar_lea.sflag [#allocation3], %s307_s21 }
  0x39   : > { %p418_p3 = pnand %p421_p2, %p622_p8 }
  0x3b   : > { %525 = dma.done.wait (!%p418_p3), %s308_s23, 768  }
  0x3c   : > { %527 = vsyncadd (!%p418_p3), %s308_s23, 4294966528  ;;  %s16_s17 = sadd.s32 1, %s550_s17   ;;  %s706_s12 = smov %s534_s13 }
  0x3d   : > { %p13_p5 = scmp.ge.s32.totalorder %s16_s17, 6   ;;  %s707_s13 = smov %s538_s14 }
  0x3e   : > { %s708_s14 = smov %s628_s25  ;;  %s709_s15 = smov %s546_s16 }
  0x3f   : > { %s710_s16 = smov %s712_s20  ;;  %15 = sbr.rel (!%p13_p5) target bundleno = 4 (0x4), region = 73 }
  0x46   :  { %313 = vsyncpa [#allocation3], 1 }
  0x47   :  { %315 = vsyncpa [#allocation3 + $0x1], 1 }

</bundles_post_ra>
